<compile_context>
chip_gen: v6e
topology: v6e:2x2x1
jax: 0.10.0
libtpu: 0.0.40
codegen_flags: <defaults>
</compile_context>

<pallas_src>
import functools

import jax
import jax.numpy as jnp
from jax.experimental import pallas as pl
from jax.experimental.pallas import tpu as pltpu

BN_EPS = 1e-5


def _round_up(n, m):
    return ((n + m - 1) // m) * m


def _pad2(a, rows, cols):
    return jnp.pad(a, ((0, rows - a.shape[0]), (0, cols - a.shape[1])))


def mlp_kernel(x_ref, w1_ref, gamma_ref, beta_ref, w2_ref, b2_ref, o_ref, acc_ref,
               *, n_valid):
    k = pl.program_id(1)  # hidden-dim (reduction) axis, innermost / "arbitrary"

    @pl.when(k == 0)
    def _init():
        acc_ref[...] = jnp.zeros_like(acc_ref)

    # ---- Linear 1 (bias omitted: exactly cancelled by BN mean subtraction) ----
    # Operands are already bf16 (cast in the wrapper); accumulate in f32 on the MXU.
    h = jnp.dot(x_ref[...], w1_ref[...], preferred_element_type=jnp.float32)  # (B_pad, tH)

    # ---- BatchNorm1d, training mode: per-feature stats over the TRUE batch ----
    # Zero-padded batch rows contribute 0 to both sums, so dividing by n_valid is exact.
    inv_n = 1.0 / n_valid
    mean = jnp.sum(h, axis=0, keepdims=True) * inv_n          # (1, tH)
    mean_sq = jnp.sum(h * h, axis=0, keepdims=True) * inv_n   # (1, tH)
    var = jnp.maximum(mean_sq - mean * mean, 0.0)             # biased variance
    scale = gamma_ref[...] * jax.lax.rsqrt(var + BN_EPS)      # (1, tH)
    shift = beta_ref[...] - mean * scale                      # (1, tH)

    # ---- fused normalize + affine + ReLU ----
    h_act = jnp.maximum(h * scale + shift, 0.0)

    # ---- Linear 2: accumulate over H tiles in f32 scratch ----
    acc_ref[...] += jnp.dot(h_act.astype(jnp.bfloat16), w2_ref[...],
                            preferred_element_type=jnp.float32)

    @pl.when(k == pl.num_programs(1) - 1)
    def _finalize():
        o_ref[...] = (acc_ref[...] + b2_ref[...]).astype(o_ref.dtype)


def _mlp_forward(x, w1, b1, gamma, beta, w2, b2, *, tile_h=512, tile_o=1024):
    """Forward pass of the MLP. `b1` is accepted for API parity but not needed in the
    kernel (a constant pre-BN bias is a no-op under training-mode BatchNorm)."""
    del b1
    B, D = x.shape
    H = w1.shape[1]
    O = w2.shape[1]

    # Pad to TPU-friendly shapes: lanes to 128, sublanes (batch) to 8.
    Bp = _round_up(B, 8)
    Dp = _round_up(D, 128)
    Hp = _round_up(H, 128)
    Op = _round_up(O, 128)

    # Lane-aligned tiles; pad H/O up to a multiple of the tile so the grid covers exactly.
    th = min(_round_up(tile_h, 128), Hp)
    to = min(_round_up(tile_o, 128), Op)
    Hp = _round_up(Hp, th)
    Op = _round_up(Op, to)
    n_h = Hp // th
    n_o = Op // to

    # bf16 inputs for the MXU operands (half the streamed bytes); BN/bias params stay f32.
    xp = _pad2(x.astype(jnp.bfloat16), Bp, Dp)
    w1p = _pad2(w1.astype(jnp.bfloat16), Dp, Hp)
    gp = _pad2(gamma, 1, Hp)
    bp = _pad2(beta, 1, Hp)
    w2p = _pad2(w2.astype(jnp.bfloat16), Hp, Op)
    b2p = _pad2(b2, 1, Op)

    kernel = functools.partial(mlp_kernel, n_valid=float(B))

    out_padded = pl.pallas_call(
        kernel,
        out_shape=jax.ShapeDtypeStruct((Bp, Op), jnp.float32),
        grid_spec=pltpu.PrefetchScalarGridSpec(
            num_scalar_prefetch=0,
            grid=(n_o, n_h),  # (parallel O tiles, arbitrary/reduction H tiles)
            in_specs=[
                pl.BlockSpec((Bp, Dp), lambda j, k: (0, 0)),  # x (whole batch: BN stats)
                pl.BlockSpec((Dp, th), lambda j, k: (0, k)),  # w1 tile
                pl.BlockSpec((1, th), lambda j, k: (0, k)),   # gamma tile
                pl.BlockSpec((1, th), lambda j, k: (0, k)),   # beta tile
                pl.BlockSpec((th, to), lambda j, k: (k, j)),  # w2 tile
                pl.BlockSpec((1, to), lambda j, k: (0, j)),   # b2 tile
            ],
            out_specs=pl.BlockSpec((Bp, to), lambda j, k: (0, j)),
            scratch_shapes=[pltpu.VMEM((Bp, to), jnp.float32)],
        ),
        compiler_params=pltpu.CompilerParams(
            dimension_semantics=("parallel", "arbitrary")),
    )(xp, w1p, gp, bp, w2p, b2p)

    return out_padded[:B, :O]


mlp_forward = jax.jit(_mlp_forward, static_argnames=("tile_h", "tile_o"))


def init_params(key, input_dim, num_hidden, out_dim):
    """PyTorch-style init (Linear: U(-1/sqrt(fan_in), +)); weights stored [in, out]."""
    k1, k2, k3, k4 = jax.random.split(key, 4)
    bound1 = 1.0 / jnp.sqrt(input_dim)
    bound2 = 1.0 / jnp.sqrt(num_hidden)
    w1 = jax.random.uniform(k1, (input_dim, num_hidden), jnp.float32, -bound1, bound1)
    b1 = jax.random.uniform(k2, (1, num_hidden), jnp.float32, -bound1, bound1)
    gamma = jnp.ones((1, num_hidden), jnp.float32)
    beta = jnp.zeros((1, num_hidden), jnp.float32)
    w2 = jax.random.uniform(k3, (num_hidden, out_dim), jnp.float32, -bound2, bound2)
    b2 = jax.random.uniform(k4, (1, out_dim), jnp.float32, -bound2, bound2)
    return w1, b1, gamma, beta, w2, b2


def reference_forward(x, w1, b1, gamma, beta, w2, b2):
    """Exact f32 reference of the PyTorch module (train-mode BatchNorm1d)."""
    h = x @ w1 + b1
    mean = jnp.mean(h, axis=0, keepdims=True)
    var = jnp.mean((h - mean) ** 2, axis=0, keepdims=True)
    h = (h - mean) / jnp.sqrt(var + BN_EPS) * gamma + beta
    h = jnp.maximum(h, 0.0)
    return h @ w2 + b2


def reference_forward_matched(x, w1, b1, gamma, beta, w2, b2):
    """Reference using the same numerics as the kernel (bf16 MXU operands, fused BN)."""
    del b1  # cancelled by BN mean subtraction
    h = jnp.dot(x.astype(jnp.bfloat16), w1.astype(jnp.bfloat16),
                preferred_element_type=jnp.float32)
    n = x.shape[0]
    mean = jnp.sum(h, axis=0, keepdims=True) / n
    var = jnp.maximum(jnp.sum(h * h, axis=0, keepdims=True) / n - mean * mean, 0.0)
    scale = gamma * jax.lax.rsqrt(var + BN_EPS)
    shift = beta - mean * scale
    h = jnp.maximum(h * scale + shift, 0.0)
    return jnp.dot(h.astype(jnp.bfloat16), w2.astype(jnp.bfloat16),
                   preferred_element_type=jnp.float32) + b2


if __name__ == "__main__":
    key = jax.random.PRNGKey(0)

    # ---- Config (a): tiny shapes (single-tile grid) ----
    input_dim, num_hidden, out_dim, batch = 16, 32, 8, 8
    kx, kp, key = jax.random.split(key, 3)
    x = jax.random.normal(kx, (batch, input_dim), jnp.float32)
    params = init_params(kp, input_dim, num_hidden, out_dim)

    out = jax.block_until_ready(mlp_forward(x, *params))
    assert out.shape == (batch, out_dim)
    ref_match = reference_forward_matched(x, *params)   # same numerics as kernel
    ref_exact = reference_forward(x, *params)           # exact f32 module semantics
    assert jnp.allclose(out, ref_match, atol=1e-3, rtol=1e-3), "tiny: mismatch vs matched ref"
    assert jnp.allclose(out, ref_exact, atol=6e-2, rtol=6e-2), "tiny: mismatch vs f32 ref"

    # ---- Config (b): multi-tile grid (3 O tiles x 3 H tiles), padded batch / D / O ----
    input_dim, num_hidden, out_dim, batch = 100, 384, 300, 20
    kx, kp = jax.random.split(key)
    x = jax.random.normal(kx, (batch, input_dim), jnp.float32)
    params = init_params(kp, input_dim, num_hidden, out_dim)

    out = jax.block_until_ready(mlp_forward(x, *params, tile_h=128, tile_o=128))
    assert out.shape == (batch, out_dim)
    ref_match = reference_forward_matched(x, *params)
    assert jnp.allclose(out, ref_match, atol=5e-3, rtol=5e-3), "multi-tile: mismatch vs matched ref"

    print("KERNEL_OK")
</pallas_src>

<mosaic_0001>
module attributes {stable_mosaic.version = 11 : i64} {
  func.func @mlp_kernel(%arg0: i32, %arg1: i32, %arg2: memref<8x128xbf16, #tpu.memory_space<vmem>>, %arg3: memref<128x128xbf16, #tpu.memory_space<vmem>>, %arg4: memref<1x128xf32, #tpu.memory_space<vmem>>, %arg5: memref<1x128xf32, #tpu.memory_space<vmem>>, %arg6: memref<128x128xbf16, #tpu.memory_space<vmem>>, %arg7: memref<1x128xf32, #tpu.memory_space<vmem>>, %arg8: memref<8x128xf32, #tpu.memory_space<vmem>>, %arg9: memref<8x128xf32, #tpu.memory_space<vmem>>) attributes {dimension_semantics = [#tpu.dimension_semantics<parallel>, #tpu.dimension_semantics<arbitrary>], iteration_bounds = array<i64: 1, 1>, scalar_prefetch = 0 : i64, scratch_operands = 1 : i64, tpu.core_type = #tpu.core_type<tc>, window_params = [{pipeline_mode = #tpu.pipeline_mode<synchronous>, transform_indices = @transform_0, window_bounds = array<i64: 8, 128>}, {transform_indices = @transform_1, window_bounds = array<i64: 128, 128>}, {transform_indices = @transform_2, window_bounds = array<i64: 1, 128>}, {transform_indices = @transform_3, window_bounds = array<i64: 1, 128>}, {transform_indices = @transform_4, window_bounds = array<i64: 128, 128>}, {transform_indices = @transform_5, window_bounds = array<i64: 1, 128>}, {transform_indices = @transform_6, window_bounds = array<i64: 8, 128>}]} {
    %c0_i32 = arith.constant 0 : i32
    %0 = arith.cmpi eq, %arg1, %c0_i32 : i32
    %1 = arith.extui %0 : i1 to i32
    %c0_i32_0 = arith.constant 0 : i32
    %2 = arith.cmpi ne, %1, %c0_i32_0 : i32
    scf.if %2 {
      %cst_24 = arith.constant 0.000000e+00 : f32
      %42 = vector.broadcast %cst_24 : f32 to vector<8x128xf32>
      %c0_25 = arith.constant 0 : index
      %c0_26 = arith.constant 0 : index
      %43 = vector.load %arg9[%c0_25, %c0_26] : memref<8x128xf32, #tpu.memory_space<vmem>>, vector<8x128xf32>
      tpu.vector_store %arg9[%c0_25, %c0_26], %42 {strides = array<i32>} : memref<8x128xf32, #tpu.memory_space<vmem>>, vector<8x128xf32>,
    } else {
    }
    %c0 = arith.constant 0 : index
    %c0_1 = arith.constant 0 : index
    %3 = vector.load %arg2[%c0, %c0_1] : memref<8x128xbf16, #tpu.memory_space<vmem>>, vector<8x128xbf16>
    %c0_2 = arith.constant 0 : index
    %c0_3 = arith.constant 0 : index
    %4 = vector.load %arg3[%c0_2, %c0_3] : memref<128x128xbf16, #tpu.memory_space<vmem>>, vector<128x128xbf16>
    %cst = arith.constant dense<0.000000e+00> : vector<8x128xf32>
    %5 = tpu.matmul %3, %4, %cst {dimension_numbers = #tpu.dot_dimension_numbers<[1], [0], [0], [1], [0, 0, 1, 1], [], []>} : vector<8x128xbf16>, vector<128x128xbf16>, vector<8x128xf32> -> vector<8x128xf32>
    %cst_4 = arith.constant dense<0.000000e+00> : vector<128xf32>
    %6 = vector.multi_reduction <add>, %5, %cst_4 [0] : vector<8x128xf32> to vector<128xf32>
    %7 = vector.shape_cast %6 : vector<128xf32> to vector<1x128xf32>
    %cst_5 = arith.constant 1.250000e-01 : f32
    %8 = vector.broadcast %cst_5 : f32 to vector<1x128xf32>
    %9 = arith.mulf %7, %8 : vector<1x128xf32>
    %10 = arith.mulf %5, %5 : vector<8x128xf32>
    %cst_6 = arith.constant dense<0.000000e+00> : vector<128xf32>
    %11 = vector.multi_reduction <add>, %10, %cst_6 [0] : vector<8x128xf32> to vector<128xf32>
    %12 = vector.shape_cast %11 : vector<128xf32> to vector<1x128xf32>
    %cst_7 = arith.constant 1.250000e-01 : f32
    %13 = vector.broadcast %cst_7 : f32 to vector<1x128xf32>
    %14 = arith.mulf %12, %13 : vector<1x128xf32>
    %15 = arith.mulf %9, %9 : vector<1x128xf32>
    %16 = arith.subf %14, %15 : vector<1x128xf32>
    %cst_8 = arith.constant 0.000000e+00 : f32
    %17 = vector.broadcast %cst_8 : f32 to vector<1x128xf32>
    %18 = arith.maximumf %16, %17 : vector<1x128xf32>
    %c0_9 = arith.constant 0 : index
    %c0_10 = arith.constant 0 : index
    %19 = vector.load %arg4[%c0_9, %c0_10] : memref<1x128xf32, #tpu.memory_space<vmem>>, vector<1x128xf32>
    %cst_11 = arith.constant 9.99999974E-6 : f32
    %20 = vector.broadcast %cst_11 : f32 to vector<1x128xf32>
    %21 = arith.addf %18, %20 : vector<1x128xf32>
    %22 = math.rsqrt %21 : vector<1x128xf32>
    %23 = arith.mulf %19, %22 : vector<1x128xf32>
    %c0_12 = arith.constant 0 : index
    %c0_13 = arith.constant 0 : index
    %24 = vector.load %arg5[%c0_12, %c0_13] : memref<1x128xf32, #tpu.memory_space<vmem>>, vector<1x128xf32>
    %25 = arith.mulf %9, %23 : vector<1x128xf32>
    %26 = arith.subf %24, %25 : vector<1x128xf32>
    %27 = vector.broadcast %23 : vector<1x128xf32> to vector<8x128xf32>
    %28 = arith.mulf %5, %27 : vector<8x128xf32>
    %29 = vector.broadcast %26 : vector<1x128xf32> to vector<8x128xf32>
    %30 = arith.addf %28, %29 : vector<8x128xf32>
    %cst_14 = arith.constant 0.000000e+00 : f32
    %31 = vector.broadcast %cst_14 : f32 to vector<8x128xf32>
    %32 = arith.maximumf %30, %31 : vector<8x128xf32>
    %c0_15 = arith.constant 0 : index
    %c0_16 = arith.constant 0 : index
    %33 = vector.load %arg9[%c0_15, %c0_16] : memref<8x128xf32, #tpu.memory_space<vmem>>, vector<8x128xf32>
    %34 = arith.truncf %32 : vector<8x128xf32> to vector<8x128xbf16>
    %c0_17 = arith.constant 0 : index
    %c0_18 = arith.constant 0 : index
    %35 = vector.load %arg6[%c0_17, %c0_18] : memref<128x128xbf16, #tpu.memory_space<vmem>>, vector<128x128xbf16>
    %cst_19 = arith.constant dense<0.000000e+00> : vector<8x128xf32>
    %36 = tpu.matmul %34, %35, %cst_19 {dimension_numbers = #tpu.dot_dimension_numbers<[1], [0], [0], [1], [0, 0, 1, 1], [], []>} : vector<8x128xbf16>, vector<128x128xbf16>, vector<8x128xf32> -> vector<8x128xf32>
    %37 = arith.addf %33, %36 : vector<8x128xf32>
    %c0_20 = arith.constant 0 : index
    %c0_21 = arith.constant 0 : index
    %38 = vector.load %arg9[%c0_20, %c0_21] : memref<8x128xf32, #tpu.memory_space<vmem>>, vector<8x128xf32>
    tpu.vector_store %arg9[%c0_20, %c0_21], %37 {strides = array<i32>} : memref<8x128xf32, #tpu.memory_space<vmem>>, vector<8x128xf32>,
    %c0_i32_22 = arith.constant 0 : i32
    %39 = arith.cmpi eq, %arg1, %c0_i32_22 : i32
    %40 = arith.extui %39 : i1 to i32
    %c0_i32_23 = arith.constant 0 : i32
    %41 = arith.cmpi ne, %40, %c0_i32_23 : i32
    scf.if %41 {
      %c0_24 = arith.constant 0 : index
      %c0_25 = arith.constant 0 : index
      %42 = vector.load %arg9[%c0_24, %c0_25] : memref<8x128xf32, #tpu.memory_space<vmem>>, vector<8x128xf32>
      %c0_26 = arith.constant 0 : index
      %c0_27 = arith.constant 0 : index
      %43 = vector.load %arg7[%c0_26, %c0_27] : memref<1x128xf32, #tpu.memory_space<vmem>>, vector<1x128xf32>
      %44 = vector.broadcast %43 : vector<1x128xf32> to vector<8x128xf32>
      %45 = arith.addf %42, %44 : vector<8x128xf32>
      %c0_28 = arith.constant 0 : index
      %c0_29 = arith.constant 0 : index
      %46 = vector.load %arg8[%c0_28, %c0_29] : memref<8x128xf32, #tpu.memory_space<vmem>>, vector<8x128xf32>
      tpu.vector_store %arg8[%c0_28, %c0_29], %45 {strides = array<i32>} : memref<8x128xf32, #tpu.memory_space<vmem>>, vector<8x128xf32>,
    } else {
    }
    return
  }
  func.func @transform_0(%arg0: i32, %arg1: i32) -> (i32, i32) {
    %c0_i32 = arith.constant 0 : i32
    %c0_i32_0 = arith.constant 0 : i32
    %c0_i32_1 = arith.constant 0 : i32
    return %c0_i32, %c0_i32_0 : i32, i32
  }
  func.func @transform_1(%arg0: i32, %arg1: i32) -> (i32, i32) {
    %c0_i32 = arith.constant 0 : i32
    %c0_i32_0 = arith.constant 0 : i32
    return %c0_i32, %arg1 : i32, i32
  }
  func.func @transform_2(%arg0: i32, %arg1: i32) -> (i32, i32) {
    %c0_i32 = arith.constant 0 : i32
    %c0_i32_0 = arith.constant 0 : i32
    return %c0_i32, %arg1 : i32, i32
  }
  func.func @transform_3(%arg0: i32, %arg1: i32) -> (i32, i32) {
    %c0_i32 = arith.constant 0 : i32
    %c0_i32_0 = arith.constant 0 : i32
    return %c0_i32, %arg1 : i32, i32
  }
  func.func @transform_4(%arg0: i32, %arg1: i32) -> (i32, i32) {
    %c0_i32 = arith.constant 0 : i32
    return %arg1, %arg0 : i32, i32
  }
  func.func @transform_5(%arg0: i32, %arg1: i32) -> (i32, i32) {
    %c0_i32 = arith.constant 0 : i32
    %c0_i32_0 = arith.constant 0 : i32
    return %c0_i32, %arg0 : i32, i32
  }
  func.func @transform_6(%arg0: i32, %arg1: i32) -> (i32, i32) {
    %c0_i32 = arith.constant 0 : i32
    %c0_i32_0 = arith.constant 0 : i32
    return %c0_i32, %arg0 : i32, i32
  }
}

</mosaic_0001>

<bundles_post_ra>
// kernel: _mlp_forward.1
= control target key start
LH: loop header
LB: loop body
LE: loop exit
PB: predicated region body
PF: predicated region fallthrough
CT: control target
= control target key end

     0   :  { %v428_v1 = vmov 0.0   ;;  %vm429_vm0 = vmmov 0   ;;  %s529_s0 = inlined_call_operand.vmem [shape: bf16[8,128], index: 0, kind: input, shape index: {}]   ;;  %s530_s1 = inlined_call_operand.vmem [shape: bf16[128,128], index: 1, kind: input, shape index: {}]   ;;  %s531_s2 = inlined_call_operand.vmem [shape: f32[1,128], index: 2, kind: input, shape index: {}]   ;;  %s532_s3 = inlined_call_operand.vmem [shape: f32[1,128], index: 3, kind: input, shape index: {}]   ;;  %s533_s4 = inlined_call_operand.vmem [shape: bf16[128,128], index: 4, kind: input, shape index: {}]   ;;  %s534_s5 = inlined_call_operand.vmem [shape: f32[1,128], index: 5, kind: input, shape index: {}]   ;;  %s535_s6 = inlined_call_operand.hbm [shape: f32[8,128], index: 6, kind: output, shape index: {}]  }
   0x1   :  { %v388_v0 = vld [vmem:[%s530_s1 + $0x38] sm:$0xff]   ;;  %345 = vmatprep.subr.bf16.mxu0 %v428_v1  ;;  %365 = vmatprep.subr.bf16.mxu1 %v428_v1  ;;  %v389_v2 = vld [vmem:[%s530_s1 + $0x30] sm:$0xff]   ;;  %v390_v3 = vld [vmem:[%s530_s1 + $0x28] sm:$0xff]  }
   0x2   :  { %346 = vmatpush3.bf16.msra.mxu0 %v388_v0  ;;  %361 = vmatprep.mubr.msk.bf16.mxu0 %vm429_vm0, %v428_v1  ;;  %v391_v4 = vld [vmem:[%s530_s1 + $0x20] sm:$0xff]  }
   0x3   :  { %347 = vmatprep.subr.bf16.mxu0 %v428_v1  ;;  %381 = vmatprep.mubr.msk.bf16.mxu1 %vm429_vm0, %v428_v1 }
   0x6   :  { %348 = vmatpush3.bf16.msra.mxu0 %v389_v2 }
   0x7   :  { %349 = vmatprep.subr.bf16.mxu0 %v428_v1 }
   0xa   :  { %350 = vmatpush3.bf16.msra.mxu0 %v390_v3 }
   0xb   :  { %351 = vmatprep.subr.bf16.mxu0 %v428_v1 }
   0xc   :  { %11 = vsyncpa [#allocation4], 0  ;;  %v392_v5 = vld [vmem:[%s530_s1 + $0x18] sm:$0xff]   ;;  %v393_v6 = vld [vmem:[%s530_s1 + $0x10] sm:$0xff]   ;;  %v161_v41 = vlaneseq }
   0xd   :  { %v394_v7 = vld [vmem:[%s530_s1 + $0x8] sm:$0xff]   ;;  %v395_v8 = vld [vmem:[%s530_s1] sm:$0xff]   ;;  %v396_v10 = vld [vmem:[%s533_s4 + $0x38] sm:$0xff]  }
   0xe   :  { %352 = vmatpush3.bf16.msra.mxu0 %v391_v4  ;;  %v30_v9 = vld [vmem:[%s529_s0] sm:$0xf]  ;;  %366 = vmatpush3.bf16.msra.mxu1 %v396_v10  ;;  %v397_v11 = vld [vmem:[%s533_s4 + $0x30] sm:$0xff]   ;;  %v398_v12 = vld [vmem:[%s533_s4 + $0x28] sm:$0xff]   ;;  %v162_v42 = vshrl.u32 %v161_v41, 7 }
   0xf   :  { %353 = vmatprep.subr.bf16.mxu0 %v428_v1  ;;  %367 = vmatprep.subr.bf16.mxu1 %v428_v1  ;;  %v399_v13 = vld [vmem:[%s533_s4 + $0x20] sm:$0xff]   ;;  %v400_v14 = vld [vmem:[%s533_s4 + $0x18] sm:$0xff]   ;;  %v401_v15 = vld [vmem:[%s533_s4 + $0x10] sm:$0xff]  }
  0x10   :  { %v402_v16 = vld [vmem:[%s533_s4 + $0x8] sm:$0xff]   ;;  %v403_v17 = vld [vmem:[%s533_s4] sm:$0xff]   ;;  %v163_v44 = vsub.s32 0, %v162_v42 }
  0x11   :  { %v153_v43 = vld [vmem:[%s531_s2] sm:$0x1]  ;;  %s430_s2 = smov [#allocation3]  }
  0x12   :  { %354 = vmatpush3.bf16.msra.mxu0 %v392_v5  ;;  %368 = vmatpush3.bf16.msra.mxu1 %v397_v11  ;;  %v157_v47 = vld [vmem:[%s532_s3] sm:$0x1]  ;;  %s302_s10 = sshll.u32 %s430_s2, 4  ;;  %s303_s10 = int_to_ptr.vmem [resolvable:$true] %s302_s10 }
  0x13   :  { %355 = vmatprep.subr.bf16.mxu0 %v428_v1  ;;  %369 = vmatprep.subr.bf16.mxu1 %v428_v1  ;;  %v326_v56 = vld [vmem:[%s534_s5] ss:$0 sm:$0xff]  ;;  %s406_s3 = scalar_lea.vmem %s303_s10, 128  ;;  %p411_p1 = scmp.lt.s32.totalorder %s303_s10, %s303_s10 }
  0x14   :  { %p407_p0 = scmp.ne.s32.totalorder %s303_s10, %s406_s3  ;;  %p412_p2 = scmp.lt.s32.totalorder %s406_s3, %s406_s3 }
  0x16   :  { %356 = vmatpush3.bf16.msra.mxu0 %v393_v6  ;;  %370 = vmatpush3.bf16.msra.mxu1 %v398_v12  ;;  %p413_p3 = por %p412_p2, %p411_p1 }
  0x17   :  { %357 = vmatprep.subr.bf16.mxu0 %v428_v1  ;;  %371 = vmatprep.subr.bf16.mxu1 %v428_v1 }
  0x18   :  { %p414_p4 = pnand %p413_p3, %p407_p0 }
  0x1a   :  { %358 = vmatpush3.bf16.msra.mxu0 %v394_v7  ;;  %372 = vmatpush3.bf16.msra.mxu1 %v399_v13 }
  0x1b   :  { %359 = vmatprep.subr.bf16.mxu0 %v428_v1  ;;  %373 = vmatprep.subr.bf16.mxu1 %v428_v1 }
  0x1e   :  { %360 = vmatpush3.bf16.msra.mxu0 %v395_v8  ;;  %374 = vmatpush3.bf16.msra.mxu1 %v400_v14 }
  0x1f   :  { %375 = vmatprep.subr.bf16.mxu1 %v428_v1 }
  0x21   :  { %362 = vmatmul.mubr.bf16.vlgmr.msra.gmra.mxu0 %v30_v9 }
  0x22   :  { %376 = vmatpush3.bf16.msra.mxu1 %v401_v15 }
  0x23   :  { %377 = vmatprep.subr.bf16.mxu1 %v428_v1 }
  0x26   :  { %378 = vmatpush3.bf16.msra.mxu1 %v402_v16 }
  0x27   :  { %379 = vmatprep.subr.bf16.mxu1 %v428_v1 }
  0x2a   :  { %380 = vmatpush3.bf16.msra.mxu1 %v403_v17 }
  0xe1   :  { %v129_v18 = vpop.f32.mrf.mxu0 }
  0xe2   :  { %v135_v19 = vrot.slane %v129_v18, 4  ;;  %v142_v20 = vmul.f32 %v129_v18, %v129_v18 }
  0xe3   :  { %v363_v21 = vpop.f32.mrf.mxu0 }
  0xe4   :  { %v136_v22 = vadd.f32 %v135_v19, %v129_v18  ;;  %v143_v23 = vrot.slane %v142_v20, 4 }
  0xe5   :  { %v132_v24 = vpop.f32.mrf.mxu0 }
  0xe6   :  { %v137_v25 = vrot.slane %v136_v22, 2  ;;  %v144_v26 = vadd.f32 %v143_v23, %v142_v20 }
  0xe7   :  { %v364_v27 = vpop.f32.mrf.mxu0 }
  0xe8   :  { %v138_v28 = vadd.f32 %v137_v25, %v136_v22  ;;  %v145_v29 = vrot.slane %v144_v26, 2 }
  0xea   :  { %v139_v30 = vrot.slane %v138_v28, 1  ;;  %v146_v31 = vadd.f32 %v145_v29, %v144_v26 }
  0xec   :  { %v140_v32 = vadd.f32 %v139_v30, %v138_v28  ;;  %v147_v33 = vrot.slane %v146_v31, 1 }
  0xee   :  { %v141_v34 = vmul.f32 0.125, %v140_v32  ;;  %v148_v35 = vadd.f32 %v147_v33, %v146_v31 }
  0xf0   :  { %v149_v36 = vmul.f32 0.125, %v148_v35  ;;  %v150_v37 = vmul.f32 %v141_v34, %v141_v34 }
  0xf2   :  { %v151_v38 = vsub.f32 %v149_v36, %v150_v37 }
  0xf4   :  { %v152_v39 = vmax.f32 %v151_v38, 0.0 }
  0xf6   :  { %v154_v40 = vadd.f32 1e-05, %v152_v39 }
  0xf8   :  { %404 = vrsqrt.f32 %v154_v40 }
 0x105   :  { %v405_v45 = vpop.eup %404 }
 0x106   :  { %v156_v46 = vmul.f32 %v405_v45, %v153_v43 }
 0x108   :  { %v164_v48 = vrot.slane %v156_v46, %v163_v44  ;;  %v158_v49 = vmul.f32 %v156_v46, %v141_v34 }
 0x10a   :  { %v159_v50 = vsub.f32 %v157_v47, %v158_v49  ;;  %v166_v51 = vmul.f32 %v164_v48, %v129_v18 }
 0x10c   :  { %v171_v52 = vrot.slane %v159_v50, %v163_v44 }
 0x10e   :  { %v173_v53 = vadd.f32 %v171_v52, %v166_v51 }
 0x110   :  { %v174_v54 = vmax.f32 %v173_v53, 0.0 }
 0x112   :  { %v176_v55 = vpack.c.bf16 %v174_v54, %v174_v54 }
 0x114   :  { %382 = vmatmul.mubr.bf16.vlgmr.msra.gmra.mxu1 %v176_v55 }
 0x1d4   :  { %v275_v57 = vpop.f32.mrf.mxu1 }
 0x1d5   :  { %v294_v58 = vadd.f32 %v326_v56, %v275_v57 }
 0x1d6   :  { %v383_v59 = vpop.f32.mrf.mxu1 }
 0x1d7   :  { %295 = vst [vmem:[#allocation3] sm:$0xff] %v294_v58 }
 0x1d8   :  { %v278_v60 = vpop.f32.mrf.mxu1 }
 0x1d9   :  { %417 = shalt.err (!%p414_p4)
}
 0x1da   :  { %305 = dma.vmem_to_hbm [thread:$0]  %s303_s10, 128, %s535_s6, [#allocation4]   ;;  %v384_v61 = vpop.f32.mrf.mxu1 }
 0x1db   :  { %426 = dma.done.wait [#allocation4], 128  }
 0x1dc   :  { %427 = vsyncadd [#allocation4], 4294967168 }
 0x1dd   :  { %309 = vsyncpa [#allocation4], 1 }

</bundles_post_ra>
